<compile_context>
chip_gen: v7x
topology: tpu7x:2x2x1
jax: 0.10.0
libtpu: 0.0.40
codegen_flags: <defaults>
</compile_context>

<pallas_src>
import numpy as np

import jax
import jax.numpy as jnp
from jax import lax
from jax.experimental import pallas as pl
from jax.experimental.pallas import tpu as pltpu


# ----------------------------- Pallas kernel ------------------------------- #

def _make_kernel(Cin, mid, H, W, pad):
    """Fused ShuffleUnit(stride=2) kernel; one image per grid step."""
    HW = H * W
    C = Cin + mid            # channels sharing the depthwise path: [x ; branch2-1x1(x)]

    def kernel(x_ref,        # (1, Cin, HW)      bf16  input image (free NCHW reshape)
               edge_ref,     # (2, HW)           f32   left / right border masks
               w2a_ref,      # (mid, Cin)        bf16  branch2 first 1x1, BN scale folded
               b2a_ref,      # (mid, 1)          f32   its folded BN bias
               dwc_ref,      # (C, 9)            f32   3x3 depthwise taps, BN scale folded
               dec_ref,      # (HW, HoWoP)       bf16  0/1 stride-2 decimation matrix
               wf_ref,       # (Cout, C)         bf16  fused final 1x1 (shuffle + BN scale)
               bf_ref,       # (Cout, 1)         f32   total output bias
               out_ref,      # (1, Cout, HoWoP)  f32   rows already in shuffled NCHW order
               u_ref):       # (C, pad+HW+pad)   f32   lane-padded scratch (halo == zero pad)
        # ---- branch2: first 1x1 conv + BN + ReLU (MXU, bf16 in / f32 accumulate)
        x = x_ref[0]                                                      # (Cin, HW) bf16
        t = jnp.dot(w2a_ref[...], x, preferred_element_type=jnp.float32)  # (mid, HW)
        t = jnp.maximum(t + b2a_ref[...], 0.0)

        # ---- u = [x ; t] written into the lane-padded scratch: the zero halo is the
        #      depthwise conv's zero padding, so every tap is a plain window slice.
        zeros_halo = jnp.zeros((C, pad), jnp.float32)
        u_ref[:, 0:pad] = zeros_halo
        u_ref[:, pad + HW:pad + HW + pad] = zeros_halo
        u_ref[0:Cin, pad:pad + HW] = x.astype(jnp.float32)
        u_ref[Cin:C, pad:pad + HW] = t
        u = u_ref[...]                                                    # (C, pad+HW+pad)

        # ---- conv-then-decimate: accumulate the 9 per-channel weighted taps (VPU),
        #      then ONE 0/1 decimation matmul performs the stride-2 subsampling (MXU).
        acc = dwc_ref[:, 4:5] * u[:, pad:pad + HW]                        # centre tap (1,1)
        for kh in range(3):
            for kw in range(3):
                if kh == 1 and kw == 1:
                    continue
                tap = kh * 3 + kw
                off = pad + (kh - 1) * W + (kw - 1)
                win = u[:, off:off + HW]                                  # (C, HW)
                if kw != 1:   # tap crosses the left/right image border within a row
                    win = win * edge_ref[kw // 2:kw // 2 + 1, :]
                acc = acc + dwc_ref[:, tap:tap + 1] * win
        d = jnp.dot(acc.astype(jnp.bfloat16), dec_ref[...],
                    preferred_element_type=jnp.float32)                   # (C, HoWoP)

        # ---- both branches' final 1x1 + BN + ReLU; channel shuffle and the
        #      depthwise-BN biases are pre-folded into wf / bf.
        o = jnp.dot(wf_ref[...], d.astype(jnp.bfloat16),
                    preferred_element_type=jnp.float32)                   # (Cout, HoWoP)
        out_ref[0] = jnp.maximum(o + bf_ref[...], 0.0)

    return kernel


# --------------------------- host-side parameter prep ---------------------- #

def prepare_kernel_params(P, in_channels, mid, eps=1e-5):
    """Fold BN (inference) into weights/biases, bake in the channel shuffle,
    and cast the MXU operands to bf16."""
    def fold(bn):
        gamma, beta, mean, var = bn
        s = gamma / jnp.sqrt(var + eps)
        return s, beta - mean * s

    s_d1, b_d1 = fold(P["bn_d1"])     # branch1: after depthwise 3x3
    s_1,  b_1  = fold(P["bn_1"])      # branch1: after 1x1
    s_2a, b_2a = fold(P["bn_2a"])     # branch2: after first 1x1
    s_d2, b_d2 = fold(P["bn_d2"])     # branch2: after depthwise 3x3
    s_2b, b_2b = fold(P["bn_2b"])     # branch2: after last 1x1

    w1  = P["w1_w"][:, :, 0, 0]                         # (mid, Cin)
    w2a = P["w2a_w"][:, :, 0, 0]                        # (mid, Cin)
    w2b = P["w2b_w"][:, :, 0, 0]                        # (mid, mid)
    dw1 = P["dw1_w"][:, 0].reshape(in_channels, 9)      # (Cin, 9), tap = kh*3 + kw
    dw2 = P["dw2_w"][:, 0].reshape(mid, 9)              # (mid, 9)

    C_out = 2 * mid

    # depthwise taps for u = [x ; t] with their BN scales folded in
    dwc = jnp.concatenate([s_d1[:, None] * dw1, s_d2[:, None] * dw2], axis=0)

    # fused final 1x1 on concat([d1; d2]); channel shuffle (2i <- branch1 ch i,
    # 2i+1 <- branch2 ch i) and the final BN scales are baked into the rows.
    wf = jnp.zeros((C_out, in_channels + mid), jnp.float32)
    wf = wf.at[0::2, :in_channels].set(s_1[:, None] * w1)
    wf = wf.at[1::2, in_channels:].set(s_2b[:, None] * w2b)

    # total output bias: depthwise-BN biases pushed through the final 1x1,
    # plus the final BN biases (interleaved in shuffled order).
    bd = jnp.concatenate([b_d1, b_d2])
    b_fin = jnp.stack([b_1, b_2b], axis=1).reshape(-1)
    bf = (wf @ bd + b_fin)[:, None]

    return {
        "Cin": in_channels, "mid": mid,
        "w2a": (s_2a[:, None] * w2a).astype(jnp.bfloat16),
        "b2a": b_2a[:, None].astype(jnp.float32),
        "dwc": dwc.astype(jnp.float32),
        "wf": wf.astype(jnp.bfloat16),
        "bf": bf.astype(jnp.float32),
    }


def _spatial_constants(H, W, Ho, Wo, HoWoP):
    """0/1 stride-2 decimation matrix (bf16, exact) and the two horizontal
    border masks for the off-centre depthwise taps."""
    D = np.zeros((H * W, HoWoP), np.float32)
    for y in range(Ho):
        for x in range(Wo):
            D[(2 * y) * W + 2 * x, y * Wo + x] = 1.0
    edge = np.ones((2, H * W), np.float32)
    edge[0, 0::W] = 0.0          # taps with kw=0 read w-1: invalid at w == 0
    edge[1, W - 1::W] = 0.0      # taps with kw=2 read w+1: invalid at w == W-1
    return jnp.asarray(D, dtype=jnp.bfloat16), jnp.asarray(edge)


# ------------------------------ JAX wrapper -------------------------------- #

def shuffle_unit_forward(x_nchw, kp):
    """x_nchw: (N, Cin, H, W) float32 -> (N, 2*mid, Ho, Wo) float32 (NCHW)."""
    N, Cin, H, W = x_nchw.shape
    mid = kp["mid"]
    C_out = 2 * mid
    C = Cin + mid
    Ho, Wo = (H - 1) // 2 + 1, (W - 1) // 2 + 1
    HW, HoWo = H * W, Ho * Wo
    HoWoP = ((HoWo + 127) // 128) * 128          # lane-dense (128-multiple) output width
    PAD = 128                                    # aligned zero halo around the flat rows

    # free NCHW reshape; bf16 halves the input DMA and feeds the MXU directly
    x3 = x_nchw.reshape(N, Cin, HW).astype(jnp.bfloat16)
    dec, edge = _spatial_constants(H, W, Ho, Wo, HoWoP)

    consts = [edge, kp["w2a"], kp["b2a"], kp["dwc"], dec, kp["wf"], kp["bf"]]
    const_spec = lambda a: pl.BlockSpec(a.shape, lambda b: (0, 0))
    # TODO(synk): at production shapes mark the grid-invariant constants
    # pipeline_mode=pl.Buffered(1) and batch several images per grid step
    # (3-D block + batched dot_general) to raise MXU M-occupancy; at this toy
    # shape their footprint is < 100 KiB so the default specs are kept.

    flops = N * (2 * mid * Cin * HW              # branch2 first 1x1
                 + 2 * C * HW * 9                # depthwise taps (VPU)
                 + 2 * C * HW * HoWoP            # decimation matmul
                 + 2 * C_out * C * HoWoP)        # fused final 1x1
    bytes_accessed = int(x3.size * 2 + N * C_out * HoWoP * 4
                         + sum(a.size * a.dtype.itemsize for a in consts))

    out3 = pl.pallas_call(
        _make_kernel(Cin, mid, H, W, PAD),
        grid=(N,),
        in_specs=[pl.BlockSpec((1, Cin, HW), lambda b: (b, 0, 0))]
                 + [const_spec(a) for a in consts],
        out_specs=pl.BlockSpec((1, C_out, HoWoP), lambda b: (b, 0, 0)),
        out_shape=jax.ShapeDtypeStruct((N, C_out, HoWoP), jnp.float32),
        scratch_shapes=[pltpu.VMEM((C, PAD + HW + PAD), jnp.float32)],
        compiler_params=pltpu.CompilerParams(
            dimension_semantics=("parallel",),       # lets v7x shard the images over 2 TCs
            vmem_limit_bytes=32 * 1024 * 1024),      # derive per generation at prod shapes
        cost_estimate=pl.CostEstimate(flops=flops, transcendentals=0,
                                      bytes_accessed=bytes_accessed),
    )(x3, *consts)

    # rows are already in shuffled NCHW channel order; strip the lane pad only
    return out3[:, :, :HoWo].reshape(N, C_out, Ho, Wo)


# --------------------------- pure-JAX reference ---------------------------- #

def _torch_conv(x, w, stride, padding, groups):
    return lax.conv_general_dilated(
        x, w, window_strides=(stride, stride),
        padding=((padding, padding), (padding, padding)),
        feature_group_count=groups,
        dimension_numbers=("NCHW", "OIHW", "NCHW"))


def _bn_ref(x, bn, eps=1e-5):
    gamma, beta, mean, var = bn
    r = lambda a: a.reshape(1, -1, 1, 1)
    return (x - r(mean)) / jnp.sqrt(r(var) + eps) * r(gamma) + r(beta)


def reference_forward(x, P):
    y1 = _torch_conv(x, P["dw1_w"], 2, 1, x.shape[1])
    y1 = _bn_ref(y1, P["bn_d1"])
    y1 = _torch_conv(y1, P["w1_w"], 1, 0, 1)
    y1 = jax.nn.relu(_bn_ref(y1, P["bn_1"]))

    y2 = _torch_conv(x, P["w2a_w"], 1, 0, 1)
    y2 = jax.nn.relu(_bn_ref(y2, P["bn_2a"]))
    y2 = _torch_conv(y2, P["dw2_w"], 2, 1, y2.shape[1])
    y2 = _bn_ref(y2, P["bn_d2"])
    y2 = _torch_conv(y2, P["w2b_w"], 1, 0, 1)
    y2 = jax.nn.relu(_bn_ref(y2, P["bn_2b"]))

    out = jnp.concatenate([y1, y2], axis=1)
    N, C, H, W = out.shape
    out = out.reshape(N, 2, C // 2, H, W).transpose(0, 2, 1, 3, 4).reshape(N, C, H, W)
    return out


# --------------------------------- main ------------------------------------ #

if __name__ == "__main__":
    in_channels, out_channels = 4, 8
    mid = out_channels // 2
    N, H, W = 2, 16, 16

    keys = iter(jax.random.split(jax.random.PRNGKey(0), 40))

    def rnd(shape, scale=0.5):
        return jax.random.normal(next(keys), shape, jnp.float32) * scale

    def bn_params(c):
        gamma = jax.random.uniform(next(keys), (c,), jnp.float32, 0.5, 1.5)
        beta = rnd((c,), 0.1)
        mean = rnd((c,), 0.1)
        var = jax.random.uniform(next(keys), (c,), jnp.float32, 0.5, 1.5)
        return gamma, beta, mean, var

    # PyTorch-layout parameters (deterministic, synthetic)
    P = {
        "dw1_w": rnd((in_channels, 1, 3, 3)), "bn_d1": bn_params(in_channels),
        "w1_w": rnd((mid, in_channels, 1, 1)), "bn_1": bn_params(mid),
        "w2a_w": rnd((mid, in_channels, 1, 1)), "bn_2a": bn_params(mid),
        "dw2_w": rnd((mid, 1, 3, 3)), "bn_d2": bn_params(mid),
        "w2b_w": rnd((mid, mid, 1, 1)), "bn_2b": bn_params(mid),
    }
    # TODO(synk): PyTorch BN in training mode uses batch statistics; here BN is
    # folded inference-mode affine (running stats), matching module.eval().

    kp = prepare_kernel_params(P, in_channels, mid)
    x = jax.random.normal(next(keys), (N, in_channels, H, W), jnp.float32)

    out = jax.block_until_ready(shuffle_unit_forward(x, kp))

    ref = reference_forward(x, P)
    assert out.shape == ref.shape == (N, out_channels, H // 2, W // 2)
    err = float(jnp.max(jnp.abs(out - ref)))
    scale = float(jnp.max(jnp.abs(ref)))
    # bf16 MXU operands (per the perf review) -> compare relative to the
    # output's dynamic range rather than the old f32-tight 5e-4 atol.
    tol = 5e-2 * max(scale, 1.0)
    assert err <= tol, f"max abs err {err} vs tol {tol} (ref max {scale})"
    print("KERNEL_OK")
</pallas_src>

<mosaic_0001>
module attributes {stable_mosaic.version = 11 : i64} {
  func.func @kernel(%arg0: i32, %arg1: memref<1x4x256xbf16, #tpu.memory_space<vmem>>, %arg2: memref<2x256xf32, #tpu.memory_space<vmem>>, %arg3: memref<4x4xbf16, #tpu.memory_space<vmem>>, %arg4: memref<4x1xf32, #tpu.memory_space<vmem>>, %arg5: memref<8x9xf32, #tpu.memory_space<vmem>>, %arg6: memref<256x128xbf16, #tpu.memory_space<vmem>>, %arg7: memref<8x8xbf16, #tpu.memory_space<vmem>>, %arg8: memref<8x1xf32, #tpu.memory_space<vmem>>, %arg9: memref<1x8x128xf32, #tpu.memory_space<vmem>>, %arg10: memref<8x512xf32, #tpu.memory_space<vmem>>) attributes {dimension_semantics = [#tpu.dimension_semantics<parallel>], iteration_bounds = array<i64: 2>, scalar_prefetch = 0 : i64, scratch_operands = 1 : i64, tpu.core_type = #tpu.core_type<tc>, window_params = [{transform_indices = @transform_0, window_bounds = array<i64: 1, 4, 256>}, {pipeline_mode = #tpu.pipeline_mode<synchronous>, transform_indices = @transform_1, window_bounds = array<i64: 2, 256>}, {pipeline_mode = #tpu.pipeline_mode<synchronous>, transform_indices = @transform_2, window_bounds = array<i64: 4, 4>}, {pipeline_mode = #tpu.pipeline_mode<synchronous>, transform_indices = @transform_3, window_bounds = array<i64: 4, 1>}, {pipeline_mode = #tpu.pipeline_mode<synchronous>, transform_indices = @transform_4, window_bounds = array<i64: 8, 9>}, {pipeline_mode = #tpu.pipeline_mode<synchronous>, transform_indices = @transform_5, window_bounds = array<i64: 256, 128>}, {pipeline_mode = #tpu.pipeline_mode<synchronous>, transform_indices = @transform_6, window_bounds = array<i64: 8, 8>}, {pipeline_mode = #tpu.pipeline_mode<synchronous>, transform_indices = @transform_7, window_bounds = array<i64: 8, 1>}, {transform_indices = @transform_8, window_bounds = array<i64: 1, 8, 128>}]} {
    %c0 = arith.constant 0 : index
    %c0_0 = arith.constant 0 : index
    %c0_1 = arith.constant 0 : index
    %0 = vector.load %arg1[%c0, %c0_0, %c0_1] : memref<1x4x256xbf16, #tpu.memory_space<vmem>>, vector<1x4x256xbf16>
    %1 = vector.shape_cast %0 : vector<1x4x256xbf16> to vector<4x256xbf16>
    %c0_2 = arith.constant 0 : index
    %c0_3 = arith.constant 0 : index
    %2 = vector.load %arg3[%c0_2, %c0_3] : memref<4x4xbf16, #tpu.memory_space<vmem>>, vector<4x4xbf16>
    %cst = arith.constant dense<0.000000e+00> : vector<4x256xf32>
    %3 = tpu.matmul %2, %1, %cst {dimension_numbers = #tpu.dot_dimension_numbers<[1], [0], [0], [1], [0, 0, 1, 1], [], []>} : vector<4x4xbf16>, vector<4x256xbf16>, vector<4x256xf32> -> vector<4x256xf32>
    %c0_4 = arith.constant 0 : index
    %c0_5 = arith.constant 0 : index
    %4 = vector.load %arg4[%c0_4, %c0_5] : memref<4x1xf32, #tpu.memory_space<vmem>>, vector<4x1xf32>
    %5 = vector.broadcast %4 : vector<4x1xf32> to vector<4x256xf32>
    %6 = arith.addf %3, %5 : vector<4x256xf32>
    %cst_6 = arith.constant 0.000000e+00 : f32
    %7 = vector.broadcast %cst_6 : f32 to vector<4x256xf32>
    %8 = arith.maximumf %6, %7 : vector<4x256xf32>
    %cst_7 = arith.constant 0.000000e+00 : f32
    %9 = vector.broadcast %cst_7 : f32 to vector<8x128xf32>
    %c0_8 = arith.constant 0 : index
    %c0_9 = arith.constant 0 : index
    %10 = vector.load %arg10[%c0_8, %c0_9] : memref<8x512xf32, #tpu.memory_space<vmem>>, vector<8x128xf32>
    tpu.vector_store %arg10[%c0_8, %c0_9], %9 {strides = array<i32>} : memref<8x512xf32, #tpu.memory_space<vmem>>, vector<8x128xf32>,
    %c0_10 = arith.constant 0 : index
    %c384 = arith.constant 384 : index
    %11 = vector.load %arg10[%c0_10, %c384] : memref<8x512xf32, #tpu.memory_space<vmem>>, vector<8x128xf32>
    tpu.vector_store %arg10[%c0_10, %c384], %9 {strides = array<i32>} : memref<8x512xf32, #tpu.memory_space<vmem>>, vector<8x128xf32>,
    %12 = arith.extf %1 : vector<4x256xbf16> to vector<4x256xf32>
    %c0_11 = arith.constant 0 : index
    %c128 = arith.constant 128 : index
    %13 = vector.load %arg10[%c0_11, %c128] : memref<8x512xf32, #tpu.memory_space<vmem>>, vector<4x256xf32>
    tpu.vector_store %arg10[%c0_11, %c128], %12 {strides = array<i32>} : memref<8x512xf32, #tpu.memory_space<vmem>>, vector<4x256xf32>,
    %c4 = arith.constant 4 : index
    %c128_12 = arith.constant 128 : index
    %14 = vector.load %arg10[%c4, %c128_12] : memref<8x512xf32, #tpu.memory_space<vmem>>, vector<4x256xf32>
    tpu.vector_store %arg10[%c4, %c128_12], %8 {strides = array<i32>} : memref<8x512xf32, #tpu.memory_space<vmem>>, vector<4x256xf32>,
    %c0_13 = arith.constant 0 : index
    %c0_14 = arith.constant 0 : index
    %15 = vector.load %arg10[%c0_13, %c0_14] : memref<8x512xf32, #tpu.memory_space<vmem>>, vector<8x512xf32>
    %c0_15 = arith.constant 0 : index
    %c4_16 = arith.constant 4 : index
    %16 = vector.load %arg5[%c0_15, %c4_16] : memref<8x9xf32, #tpu.memory_space<vmem>>, vector<8x1xf32>
    %17 = vector.extract_strided_slice %15 {offsets = [0, 128], sizes = [8, 256], strides = [1, 1]} : vector<8x512xf32> to vector<8x256xf32>
    %18 = vector.broadcast %16 : vector<8x1xf32> to vector<8x256xf32>
    %19 = arith.mulf %18, %17 : vector<8x256xf32>
    %20 = vector.extract_strided_slice %15 {offsets = [0, 111], sizes = [8, 256], strides = [1, 1]} : vector<8x512xf32> to vector<8x256xf32>
    %c0_17 = arith.constant 0 : index
    %c0_18 = arith.constant 0 : index
    %21 = vector.load %arg2[%c0_17, %c0_18] : memref<2x256xf32, #tpu.memory_space<vmem>>, vector<1x256xf32>
    %22 = vector.broadcast %21 : vector<1x256xf32> to vector<8x256xf32>
    %23 = arith.mulf %20, %22 : vector<8x256xf32>
    %c0_19 = arith.constant 0 : index
    %c0_20 = arith.constant 0 : index
    %24 = vector.load %arg5[%c0_19, %c0_20] : memref<8x9xf32, #tpu.memory_space<vmem>>, vector<8x1xf32>
    %25 = vector.broadcast %24 : vector<8x1xf32> to vector<8x256xf32>
    %26 = arith.mulf %25, %23 : vector<8x256xf32>
    %27 = arith.addf %19, %26 : vector<8x256xf32>
    %28 = vector.extract_strided_slice %15 {offsets = [0, 112], sizes = [8, 256], strides = [1, 1]} : vector<8x512xf32> to vector<8x256xf32>
    %c0_21 = arith.constant 0 : index
    %c1 = arith.constant 1 : index
    %29 = vector.load %arg5[%c0_21, %c1] : memref<8x9xf32, #tpu.memory_space<vmem>>, vector<8x1xf32>
    %30 = vector.broadcast %29 : vector<8x1xf32> to vector<8x256xf32>
    %31 = arith.mulf %30, %28 : vector<8x256xf32>
    %32 = arith.addf %27, %31 : vector<8x256xf32>
    %33 = vector.extract_strided_slice %15 {offsets = [0, 113], sizes = [8, 256], strides = [1, 1]} : vector<8x512xf32> to vector<8x256xf32>
    %c1_22 = arith.constant 1 : index
    %c0_23 = arith.constant 0 : index
    %34 = vector.load %arg2[%c1_22, %c0_23] : memref<2x256xf32, #tpu.memory_space<vmem>>, vector<1x256xf32>
    %35 = vector.broadcast %34 : vector<1x256xf32> to vector<8x256xf32>
    %36 = arith.mulf %33, %35 : vector<8x256xf32>
    %c0_24 = arith.constant 0 : index
    %c2 = arith.constant 2 : index
    %37 = vector.load %arg5[%c0_24, %c2] : memref<8x9xf32, #tpu.memory_space<vmem>>, vector<8x1xf32>
    %38 = vector.broadcast %37 : vector<8x1xf32> to vector<8x256xf32>
    %39 = arith.mulf %38, %36 : vector<8x256xf32>
    %40 = arith.addf %32, %39 : vector<8x256xf32>
    %41 = vector.extract_strided_slice %15 {offsets = [0, 127], sizes = [8, 256], strides = [1, 1]} : vector<8x512xf32> to vector<8x256xf32>
    %c0_25 = arith.constant 0 : index
    %c0_26 = arith.constant 0 : index
    %42 = vector.load %arg2[%c0_25, %c0_26] : memref<2x256xf32, #tpu.memory_space<vmem>>, vector<1x256xf32>
    %43 = vector.broadcast %42 : vector<1x256xf32> to vector<8x256xf32>
    %44 = arith.mulf %41, %43 : vector<8x256xf32>
    %c0_27 = arith.constant 0 : index
    %c3 = arith.constant 3 : index
    %45 = vector.load %arg5[%c0_27, %c3] : memref<8x9xf32, #tpu.memory_space<vmem>>, vector<8x1xf32>
    %46 = vector.broadcast %45 : vector<8x1xf32> to vector<8x256xf32>
    %47 = arith.mulf %46, %44 : vector<8x256xf32>
    %48 = arith.addf %40, %47 : vector<8x256xf32>
    %49 = vector.extract_strided_slice %15 {offsets = [0, 129], sizes = [8, 256], strides = [1, 1]} : vector<8x512xf32> to vector<8x256xf32>
    %c1_28 = arith.constant 1 : index
    %c0_29 = arith.constant 0 : index
    %50 = vector.load %arg2[%c1_28, %c0_29] : memref<2x256xf32, #tpu.memory_space<vmem>>, vector<1x256xf32>
    %51 = vector.broadcast %50 : vector<1x256xf32> to vector<8x256xf32>
    %52 = arith.mulf %49, %51 : vector<8x256xf32>
    %c0_30 = arith.constant 0 : index
    %c5 = arith.constant 5 : index
    %53 = vector.load %arg5[%c0_30, %c5] : memref<8x9xf32, #tpu.memory_space<vmem>>, vector<8x1xf32>
    %54 = vector.broadcast %53 : vector<8x1xf32> to vector<8x256xf32>
    %55 = arith.mulf %54, %52 : vector<8x256xf32>
    %56 = arith.addf %48, %55 : vector<8x256xf32>
    %57 = vector.extract_strided_slice %15 {offsets = [0, 143], sizes = [8, 256], strides = [1, 1]} : vector<8x512xf32> to vector<8x256xf32>
    %c0_31 = arith.constant 0 : index
    %c0_32 = arith.constant 0 : index
    %58 = vector.load %arg2[%c0_31, %c0_32] : memref<2x256xf32, #tpu.memory_space<vmem>>, vector<1x256xf32>
    %59 = vector.broadcast %58 : vector<1x256xf32> to vector<8x256xf32>
    %60 = arith.mulf %57, %59 : vector<8x256xf32>
    %c0_33 = arith.constant 0 : index
    %c6 = arith.constant 6 : index
    %61 = vector.load %arg5[%c0_33, %c6] : memref<8x9xf32, #tpu.memory_space<vmem>>, vector<8x1xf32>
    %62 = vector.broadcast %61 : vector<8x1xf32> to vector<8x256xf32>
    %63 = arith.mulf %62, %60 : vector<8x256xf32>
    %64 = arith.addf %56, %63 : vector<8x256xf32>
    %65 = vector.extract_strided_slice %15 {offsets = [0, 144], sizes = [8, 256], strides = [1, 1]} : vector<8x512xf32> to vector<8x256xf32>
    %c0_34 = arith.constant 0 : index
    %c7 = arith.constant 7 : index
    %66 = vector.load %arg5[%c0_34, %c7] : memref<8x9xf32, #tpu.memory_space<vmem>>, vector<8x1xf32>
    %67 = vector.broadcast %66 : vector<8x1xf32> to vector<8x256xf32>
    %68 = arith.mulf %67, %65 : vector<8x256xf32>
    %69 = arith.addf %64, %68 : vector<8x256xf32>
    %70 = vector.extract_strided_slice %15 {offsets = [0, 145], sizes = [8, 256], strides = [1, 1]} : vector<8x512xf32> to vector<8x256xf32>
    %c1_35 = arith.constant 1 : index
    %c0_36 = arith.constant 0 : index
    %71 = vector.load %arg2[%c1_35, %c0_36] : memref<2x256xf32, #tpu.memory_space<vmem>>, vector<1x256xf32>
    %72 = vector.broadcast %71 : vector<1x256xf32> to vector<8x256xf32>
    %73 = arith.mulf %70, %72 : vector<8x256xf32>
    %c0_37 = arith.constant 0 : index
    %c8 = arith.constant 8 : index
    %74 = vector.load %arg5[%c0_37, %c8] : memref<8x9xf32, #tpu.memory_space<vmem>>, vector<8x1xf32>
    %75 = vector.broadcast %74 : vector<8x1xf32> to vector<8x256xf32>
    %76 = arith.mulf %75, %73 : vector<8x256xf32>
    %77 = arith.addf %69, %76 : vector<8x256xf32>
    %78 = arith.truncf %77 : vector<8x256xf32> to vector<8x256xbf16>
    %c0_38 = arith.constant 0 : index
    %c0_39 = arith.constant 0 : index
    %79 = vector.load %arg6[%c0_38, %c0_39] : memref<256x128xbf16, #tpu.memory_space<vmem>>, vector<256x128xbf16>
    %cst_40 = arith.constant dense<0.000000e+00> : vector<8x128xf32>
    %80 = tpu.matmul %78, %79, %cst_40 {dimension_numbers = #tpu.dot_dimension_numbers<[1], [0], [0], [1], [0, 0, 1, 1], [], []>} : vector<8x256xbf16>, vector<256x128xbf16>, vector<8x128xf32> -> vector<8x128xf32>
    %c0_41 = arith.constant 0 : index
    %c0_42 = arith.constant 0 : index
    %81 = vector.load %arg7[%c0_41, %c0_42] : memref<8x8xbf16, #tpu.memory_space<vmem>>, vector<8x8xbf16>
    %82 = arith.truncf %80 : vector<8x128xf32> to vector<8x128xbf16>
    %cst_43 = arith.constant dense<0.000000e+00> : vector<8x128xf32>
    %83 = tpu.matmul %81, %82, %cst_43 {dimension_numbers = #tpu.dot_dimension_numbers<[1], [0], [0], [1], [0, 0, 1, 1], [], []>} : vector<8x8xbf16>, vector<8x128xbf16>, vector<8x128xf32> -> vector<8x128xf32>
    %c0_44 = arith.constant 0 : index
    %c0_45 = arith.constant 0 : index
    %84 = vector.load %arg8[%c0_44, %c0_45] : memref<8x1xf32, #tpu.memory_space<vmem>>, vector<8x1xf32>
    %85 = vector.broadcast %84 : vector<8x1xf32> to vector<8x128xf32>
    %86 = arith.addf %83, %85 : vector<8x128xf32>
    %cst_46 = arith.constant 0.000000e+00 : f32
    %87 = vector.broadcast %cst_46 : f32 to vector<8x128xf32>
    %88 = arith.maximumf %86, %87 : vector<8x128xf32>
    %c0_47 = arith.constant 0 : index
    %c0_48 = arith.constant 0 : index
    %c0_49 = arith.constant 0 : index
    %89 = vector.load %arg9[%c0_47, %c0_48, %c0_49] : memref<1x8x128xf32, #tpu.memory_space<vmem>>, vector<1x8x128xf32>
    %90 = vector.shape_cast %89 : vector<1x8x128xf32> to vector<8x128xf32>
    %91 = vector.shape_cast %88 : vector<8x128xf32> to vector<1x8x128xf32>
    tpu.vector_store %arg9[%c0_47, %c0_48, %c0_49], %91 {strides = array<i32>} : memref<1x8x128xf32, #tpu.memory_space<vmem>>, vector<1x8x128xf32>,
    return
  }
  func.func @transform_0(%arg0: i32) -> (i32, i32, i32) {
    %c0_i32 = arith.constant 0 : i32
    %c0_i32_0 = arith.constant 0 : i32
    %c0_i32_1 = arith.constant 0 : i32
    return %arg0, %c0_i32, %c0_i32_0 : i32, i32, i32
  }
  func.func @transform_1(%arg0: i32) -> (i32, i32) {
    %c0_i32 = arith.constant 0 : i32
    %c0_i32_0 = arith.constant 0 : i32
    %c0_i32_1 = arith.constant 0 : i32
    return %c0_i32, %c0_i32_0 : i32, i32
  }
  func.func @transform_2(%arg0: i32) -> (i32, i32) {
    %c0_i32 = arith.constant 0 : i32
    %c0_i32_0 = arith.constant 0 : i32
    %c0_i32_1 = arith.constant 0 : i32
    return %c0_i32, %c0_i32_0 : i32, i32
  }
  func.func @transform_3(%arg0: i32) -> (i32, i32) {
    %c0_i32 = arith.constant 0 : i32
    %c0_i32_0 = arith.constant 0 : i32
    %c0_i32_1 = arith.constant 0 : i32
    return %c0_i32, %c0_i32_0 : i32, i32
  }
  func.func @transform_4(%arg0: i32) -> (i32, i32) {
    %c0_i32 = arith.constant 0 : i32
    %c0_i32_0 = arith.constant 0 : i32
    %c0_i32_1 = arith.constant 0 : i32
    return %c0_i32, %c0_i32_0 : i32, i32
  }
  func.func @transform_5(%arg0: i32) -> (i32, i32) {
    %c0_i32 = arith.constant 0 : i32
    %c0_i32_0 = arith.constant 0 : i32
    %c0_i32_1 = arith.constant 0 : i32
    return %c0_i32, %c0_i32_0 : i32, i32
  }
  func.func @transform_6(%arg0: i32) -> (i32, i32) {
    %c0_i32 = arith.constant 0 : i32
    %c0_i32_0 = arith.constant 0 : i32
    %c0_i32_1 = arith.constant 0 : i32
    return %c0_i32, %c0_i32_0 : i32, i32
  }
  func.func @transform_7(%arg0: i32) -> (i32, i32) {
    %c0_i32 = arith.constant 0 : i32
    %c0_i32_0 = arith.constant 0 : i32
    %c0_i32_1 = arith.constant 0 : i32
    return %c0_i32, %c0_i32_0 : i32, i32
  }
  func.func @transform_8(%arg0: i32) -> (i32, i32, i32) {
    %c0_i32 = arith.constant 0 : i32
    %c0_i32_0 = arith.constant 0 : i32
    %c0_i32_1 = arith.constant 0 : i32
    return %arg0, %c0_i32, %c0_i32_0 : i32, i32, i32
  }
}

</mosaic_0001>

<bundles_post_ra>
// kernel: tpu_custom_call.1
= control target key start
LH: loop header
LB: loop body
LE: loop exit
PB: predicated region body
PF: predicated region fallthrough
CT: control target
= control target key end

     0   :  { %13 = vsyncpa [#allocation4], 0  ;;  %s1819_s0 = inlined_call_operand.vmem [shape: bf16[2,4,256], index: 0, kind: input, shape index: {}]   ;;  %s1820_s1 = inlined_call_operand.hbm [shape: f32[2,256], index: 1, kind: input, shape index: {}]   ;;  %s1821_s2 = inlined_call_operand.hbm [shape: bf16[4,4], index: 2, kind: input, shape index: {}]   ;;  %s1822_s3 = inlined_call_operand.vmem [shape: f32[4,1], index: 3, kind: input, shape index: {}]   ;;  %s1823_s4 = inlined_call_operand.vmem [shape: f32[8,9], index: 4, kind: input, shape index: {}]   ;;  %s1824_s5 = inlined_call_operand.hbm [shape: bf16[256,128], index: 5, kind: input, shape index: {}]   ;;  %s1825_s6 = inlined_call_operand.vmem [shape: bf16[8,8], index: 6, kind: input, shape index: {}]   ;;  %s1826_s7 = inlined_call_operand.vmem [shape: f32[8,1], index: 7, kind: input, shape index: {}]   ;;  %s1827_s8 = inlined_call_operand.hbm [shape: f32[2,8,128], index: 8, kind: output, shape index: {}]  }
   0x1   :  { %14 = vsyncpa [#allocation7], 0 }
   0x2   :  { %15 = vsyncpa [#allocation5], 0 }
   0x3   :  { %17 = vsyncpa [#allocation5 + $0x1], 0  ;;  %s1459_s27 = smov 0   ;;  %s1461_s28 = smov 0  }
   0x4   :  { %s1463_s29 = smov 0   ;;  %s1465_s30 = smov 0  }
   0x5 LB: > { %1832 = sst [smem:[#allocation13_spill]] %s1382_s29  ;;  %s1480_s9 = sadd.s32 4294967295, %s1386_s30   ;;  %s1386_s30 = sphi %s1465_s30, %s1851_s30   ;;  %s1382_s29 = sphi %s1463_s29, %s1850_s29   ;;  %s1378_s28 = sphi %s1461_s28, %s1849_s28   ;;  %s1374_s27 = sphi %s1459_s27, %s1848_s27  }
   0x6   : > { %s1047_s10 = sadd.s32 4294967294, %s1386_s30   ;;  %s1484_s11 = sadd.s32 1, %s1386_s30  }
   0x7   : > { %s203_s12 = sadd.s32 1, %s1382_s29  ;;  %s200_s13 = ssub.s32 %s1386_s30, %s1484_s11 }
   0x8   : > { %p213_p0 = scmp.ne.s32.totalorder %s1382_s29, %s1378_s28  ;;  %p201_p1 = scmp.eq.s32.totalorder %s200_s13, 0 }
   0x9   : > { %p214_p2 = scmp.eq.s32.totalorder %s1480_s9, 1  ;;  %p219_p3 = scmp.ne.s32.totalorder %s1378_s28, %s1374_s27 }
   0xa   : > { %p220_p4 = scmp.eq.s32.totalorder %s1047_s10, 1  ;;  %p1048_p7 = scmp.ge.s32.totalorder %s1386_s30, 1 }
   0xb   : > { %s1495_s14 = scalar_select %p201_p1, %s1382_s29, %s203_s12  }
   0xc   : > { %p1497_p5 = por %p214_p2, %p213_p0  ;;  %p1501_p6 = por %p220_p4, %p219_p3 }
   0xd   : > { %1833 = sst [smem:[#allocation14_spill]] %s1495_s14  ;;  %p227_p8 = scmp.lt.s32.totalorder %s1386_s30, 3 }
   0xe   : > { %s1834_s15 = scalar_select %p1497_p5, 1, 0 }
   0xf   : > { %s1835_s16 = scalar_select %p1501_p6, 1, 0 }
  0x10   : > { %p1828_p9 = scmp.eq.s32.totalorder %s1480_s9, 0  ;;  %p1508_p10 = pnand %p1048_p7, %p227_p8 }
  0x11   : > { %s1388_s18 = smov [#allocation6]   ;;  %s1389_s20 = smov [#allocation3]  }
  0x12   : > { %s1836_s17 = scalar_select %p1508_p10, 1, 0 }
  0x13   : > { %s251_s19 = sshll.u32 %s1388_s18, 4  ;;  %p1128_p11 = pneg %p1508_p10  ;;  %s252_s19 = int_to_ptr.vmem [resolvable:$true] %s251_s19 }
  0x14   : > { %s240_s21 = sshll.u32 %s1389_s20, 4  ;;  %s1390_s23 = smov [#allocation8]   ;;  %s1520_s21 = int_to_ptr.vmem [resolvable:$true] %s240_s21 }
  0x15   : > { %p1516_p12 = pnand %p1828_p9, %p1128_p11  ;;  %s267_s24 = sshll.u32 %s1390_s23, 4  ;;  %s1522_s24 = int_to_ptr.vmem [resolvable:$true] %s267_s24 }
  0x16   : > { %s1232_s10 = scalar_lea.hbm %s1821_s2, 32 }
  0x17   : > { %p1233_p13 = scmp.ne.s32.totalorder %s1821_s2, %s1232_s10  ;;  %p1532_p0 = pneg %p1516_p12 }
  0x18   : > { %p1239_p3 = scmp.lt.u32.totalorder %s1232_s10, %s1821_s2 }
  0x19   : > { %p1235_p1 = pnand %p1532_p0, %p1233_p13 }
  0x1b   : > { %p1236_p2 = pneg %p1235_p1 }
  0x1d   : > { %p1241_p4 = pnand %p1239_p3, %p1236_p2 }
  0x1f   : > { %1244 = shalt.err (!%p1241_p4)
}
  0x20   : > { %s1245_s25 = scalar_lea.vmem %s252_s19, 32  ;;  %p1253_p9 = scmp.lt.s32.totalorder %s252_s19, %s252_s19 }
  0x21   : > { %p1246_p7 = scmp.ne.s32.totalorder %s252_s19, %s1245_s25  ;;  %p1254_p6 = scmp.lt.s32.totalorder %s1245_s25, %s1245_s25 }
  0x23   : > { %p1248_p8 = pnand %p1246_p7, %p1532_p0  ;;  %p1255_p5 = por %p1254_p6, %p1253_p9 }
  0x25   : > { %p1249_p11 = pneg %p1248_p8 }
  0x27   : > { %p1256_p10 = pnand %p1255_p5, %p1249_p11 }
  0x29   : > { %1259 = shalt.err (!%p1256_p10)
}
  0x2a   : > { %1134 = dma.hbm_to_vmem [thread:$0]  (!%p1516_p12), %s1821_s2, 32, %s252_s19, [#allocation7]  }
  0x2b   : > { %s1260_s20 = scalar_lea.hbm %s1820_s1, 64 }
  0x2c   : > { %p1261_p13 = scmp.ne.s32.totalorder %s1820_s1, %s1260_s20  ;;  %p1267_p5 = scmp.lt.u32.totalorder %s1260_s20, %s1820_s1 }
  0x2e   : > { %p1263_p1 = pnand %p1261_p13, %p1532_p0 }
  0x30   : > { %p1264_p6 = pneg %p1263_p1 }
  0x32   : > { %p1269_p9 = pnand %p1267_p5, %p1264_p6 }
  0x34   : > { %1272 = shalt.err (!%p1269_p9)
}
  0x35   : > { %s1273_s19 = scalar_lea.vmem %s1520_s21, 64  ;;  %p1281_p4 = scmp.lt.s32.totalorder %s1520_s21, %s1520_s21 }
  0x36   : > { %p1274_p10 = scmp.ne.s32.totalorder %s1520_s21, %s1273_s19  ;;  %p1282_p7 = scmp.lt.s32.totalorder %s1273_s19, %s1273_s19 }
  0x38   : > { %p1276_p2 = pnand %p1274_p10, %p1532_p0  ;;  %p1283_p8 = por %p1282_p7, %p1281_p4 }
  0x3a   : > { %p1277_p3 = pneg %p1276_p2 }
  0x3c   : > { %p1284_p11 = pnand %p1283_p8, %p1277_p3 }
  0x3e   : > { %1287 = shalt.err (!%p1284_p11)
}
  0x3f   : > { %1131 = dma.hbm_to_vmem [thread:$0]  (!%p1516_p12), %s1820_s1, 64, %s1520_s21, [#allocation4]  }
  0x40   : > { %s1288_s10 = scalar_lea.hbm %s1824_s5, 2048 }
  0x41   : > { %p1289_p13 = scmp.ne.s32.totalorder %s1824_s5, %s1288_s10  ;;  %p1295_p5 = scmp.lt.u32.totalorder %s1288_s10, %s1824_s5 }
  0x43   : > { %p1291_p1 = pnand %p1289_p13, %p1532_p0 }
  0x45   : > { %p1292_p6 = pneg %p1291_p1 }
  0x47   : > { %p1297_p9 = pnand %p1295_p5, %p1292_p6 }
  0x49   : > { %1300 = shalt.err (!%p1297_p9)
}
  0x4a   : > { %s1301_s21 = scalar_lea.vmem %s1522_s24, 2048  ;;  %p1309_p4 = scmp.lt.s32.totalorder %s1522_s24, %s1522_s24 }
  0x4b   : > { %p1302_p10 = scmp.ne.s32.totalorder %s1522_s24, %s1301_s21  ;;  %p1310_p7 = scmp.lt.s32.totalorder %s1301_s21, %s1301_s21 }
  0x4d   : > { %p1304_p2 = pnand %p1302_p10, %p1532_p0  ;;  %p1311_p8 = por %p1310_p7, %p1309_p4 }
  0x4f   : > { %p1305_p3 = pneg %p1304_p2 }
  0x51   : > { %p1312_p11 = pnand %p1311_p8, %p1305_p3 }
  0x53   : > { %1315 = shalt.err (!%p1312_p11)
}
  0x54   : > { %s1391_s19 = smov 64   ;;  %s1392_s29 = smov 4  }
  0x55   : > { %1137 = dma.hbm_to_vmem [thread:$0]  (!%p1516_p12), %s1824_s5, 2048, %s1522_s24, [#allocation7], %s1391_s19, %s1391_s19, %s1392_s29  }
  0x56   : > { %p1839_p13 = scmp.ne.s32.totalorder %s1836_s17, 0 }
  0x57   : > { %p1840_p0 = scmp.eq.s32.totalorder (!%p1839_p13), %s1480_s9, 0 }
  0x58   : > { %297 = sbr.rel (%p1839_p13) target bundleno = 945 (0x3b1), region = 52 }
  0x5f   : > { %1361 = dma.done.wait (%p1840_p0), [#allocation4], 64   ;;  %p1841_p1 = pmov %p1840_p0 }
  0x60   : > { %p1842_p6 = pmov %p1840_p0 }
  0x61   : > { %1363 = vsyncadd (%p1841_p1), [#allocation4], 4294967232 }
  0x62   : > { %1365 = dma.done.wait (%p1842_p6), [#allocation7], 2080   ;;  %p1843_p5 = pmov %p1840_p0 }
  0x63   : > { %p339_p9 = scmp.lt.s32.totalorder %s1480_s9, 1  ;;  %v357_v0 = vlaneseq  ;;  %v1393_v1 = vmov 1983009808   ;;  %v1394_v4 = vmov 0   ;;  %v1395_v5 = vmov 1   ;;  %v436_v9 = vld [vmem:[%s1823_s4] sm:$0xff] }
  0x64   : > { %1367 = vsyncadd (%p1843_p5), [#allocation7], 4294965216  ;;  %v355_v2 = vunpack.c.l.s4 %v1393_v1  ;;  %405 = vmatprep.mubr.bf16.mxu0 %v1394_v4  ;;  %1207 = vset.pattern.permute.xlu1 %v1395_v5  ;;  %vm366_vm0 = vcmask 1041408   ;;  %vm362_vm1 = vcmask 31744   ;;  %v347_v12 = vld [vmem:[%s1822_s3] sm:$0xf] }
  0x65   : > { %s340_s17 = scalar_select %p339_p9, %s1480_s9, 1  ;;  %v358_v3 = vshrl.u32 %v357_v0, 7  ;;  %1206 = vset.pattern.permute.xlu0 %v1394_v4  ;;  %490 = vperm.xlu1 %1207, %v436_v9   ;;  %v444_v13 = vld [vmem:[#allocation3] ss:$2 sm:$0x3]  ;;  %v1396_v20 = vmov 2  }
  0x66   : > { %v356_v6 = vunpack.c.0.s8 %v355_v2  ;;  %350 = vperm.xlu0 %1206, %v347_v12   ;;  %v346_v19 = vld [vmem:[#allocation6] sm:$0x3]  ;;  %v513_v21 = vld [vmem:[#allocation3 + $0x1] ss:$2 sm:$0x3]  ;;  %v1397_v24 = vmov 0.0  }
  0x67   : > { %s1083_s22 = sshll.u32 %s340_s17, 2  ;;  %v448_v14 = vsub.s32 0, %v358_v3  ;;  %v452_v18 = vsub.s32 1, %v358_v3  ;;  %s1398_s25 = smov 111   ;;  %v1399_v26 = vmov 3   ;;  %v1401_v28 = vmov 5  }
  0x68   : > { %s343_s12 = scalar_lea.vmem %s1819_s0, %s1083_s22  ;;  %v359_v7 = vsub.s32 %v356_v6, %v358_v3  ;;  %s1400_s21 = smov 113   ;;  %v1403_v29 = vmov 6   ;;  %v1404_v30 = vmov 7   ;;  %v1406_v31 = vmov 8  }
  0x69   : > { %v345_v8 = vld [vmem:[%s343_s12] sm:$0xf]  ;;  %1208 = vset.pattern.permute.xlu1 %v1396_v20  ;;  %v449_v22 = vrot.slane %v444_v13, %v448_v14  ;;  %v453_v23 = vrot.slane %v444_v13, %v452_v18  ;;  %v518_v25 = vrot.slane %v513_v21, %v448_v14  ;;  %v522_v27 = vrot.slane %v513_v21, %v452_v18  ;;  %s1402_s19 = smov 127   ;;  %s1405_s29 = smov 1   ;;  %v1218_v13 = vld [vmem:[#allocation8 + $0x48] sm:$0xff]   ;;  %v1220_v18 = vld [vmem:[#allocation8 + $0x50] sm:$0xff]  }
  0x6a   : > { %v360_v10 = vrot.slane %v345_v8, %v359_v7  ;;  %v418_v11 = vunpack.c.l.bf16 %v345_v8  ;;  %536 = vperm.xlu1 %1208, %v436_v9   ;;  %467 = vperm.xlu0 %1206, %v436_v9   ;;  %s1407_s14 = smov 15   ;;  %v1408_v32 = vmov 4   ;;  %s1409_s26 = smov 17   ;;  %vm458_vm2 = vcmask 908288   ;;  %v1219_v14 = vld [vmem:[#allocation8 + $0x8] sm:$0xff]   ;;  %v1221_v20 = vld [vmem:[#allocation8 + $0x10] sm:$0xff]  }
  0x6b   : > { %s1410_s17 = smov 16   ;;  %s1411_s22 = smov 112   ;;  %vm527_vm3 = vcmask 924672   ;;  %vm562_vm4 = vcmask 1039360   ;;  %vm586_vm5 = vcmask 7168   ;;  %vm551_vm6 = vcmask 121856  }
  0x6c   : > { %v361_v15 = vcombine.high %v360_v10, %v360_v10  ;;  %v420_v16 = vcombine.high %v418_v11, %v418_v11  ;;  %422 = vst [vmem:[#allocation2 + $0x8] sm:$0xf] %v418_v11  ;;  %v368_v17 = vsel %vm366_vm0, %v360_v10, 0  ;;  %v1217_v10 = vld [vmem:[#allocation8] sm:$0xff]   ;;  %vm482_vm7 = vcmask 138240   ;;  %s336_s13 = sand.u32 1, %s1378_s28  }
  0x6d   : > { %vm505_vm8 = vcmask 130048   ;;  %vm675_vm9 = vcmask 916480   ;;  %vm1412_vm10 = vmmov 0   ;;  %vm897_vm11 = vcmask 1043456   ;;  %s1057_s20 = sshll.u32 %s336_s13, 3  ;;  %s1080_s23 = sshll.u32 %s1480_s9, 7 }
  0x6e   : > { %1060 = vmatprep.subr.msk.bf16.mxu0 %vm366_vm0, %v361_v15  ;;  %423 = vst [vmem:[#allocation2 + $0x10] sm:$0xf] %v420_v16  ;;  %454 = vrot.lane.b32.xlu1 %v449_v22, %s1398_s25  ;;  %vm893_vm12 = vcmask 64512   ;;  %p1844_p10 = scmp.ne.s32.totalorder %s1834_s15, 0 }
  0x6f   : > { %374 = vmatpush1.bf16.msra.mxu0 %v368_v17  ;;  %456 = vrot.lane.b32.xlu0 %v453_v23, %s1398_s25 }
  0x70   : > { %1108 = vmatprep.subr.bf16.mxu0 %v1397_v24  ;;  %1209 = vset.pattern.permute.xlu0 %v1399_v26 }
  0x72   : > { %1061 = vmatmul.mubr.msk.bf16.vlgmr.msra.gmra.mrb[0].mxu0 %vm362_vm1, %v346_v19  ;;  %523 = vrot.lane.b32.xlu1 %v518_v25, %s1400_s21 }
  0x73   : > { %571 = vperm.xlu0 %1209, %v436_v9   ;;  %1110 = vmatprep.mubr.msk.bf16.mxu0 %vm1412_vm10, %v1397_v24 }
  0x76   : > { %525 = vrot.lane.b32.xlu1 %v522_v27, %s1400_s21 }
  0x77   : > { %1210 = vset.pattern.permute.xlu0 %v1401_v28  ;;  %v1222_v28 = vld [vmem:[#allocation8 + $0x58] sm:$0xff]  }
  0x78   : > { %605 = vperm.xlu0 %1210, %v436_v9  }
  0x7a   : > { %558 = vrot.lane.b32.xlu1 %v449_v22, %s1402_s19 }
  0x7c   : > { %1211 = vset.pattern.permute.xlu0 %v1403_v29  ;;  %v1223_v29 = vld [vmem:[#allocation8 + $0x18] sm:$0xff]  }
  0x7d   : > { %638 = vperm.xlu0 %1211, %v436_v9  }
  0x7e   : > { %560 = vrot.lane.b32.xlu1 %v453_v23, %s1402_s19 }
  0x81   : > { %1212 = vset.pattern.permute.xlu0 %v1404_v30 }
  0x82   : > { %593 = vrot.lane.b32.xlu1 %v518_v25, %s1405_s29  ;;  %660 = vperm.xlu0 %1212, %v436_v9  }
  0x86   : > { %595 = vrot.lane.b32.xlu1 %v522_v27, %s1405_s29  ;;  %1213 = vset.pattern.permute.xlu0 %v1406_v31 }
  0x87   : > { %694 = vperm.xlu0 %1213, %v436_v9  }
  0x8a   : > { %626 = vrot.lane.b32.xlu1 %v449_v22, %s1407_s14 }
  0x8b   : > { %1214 = vset.pattern.permute.xlu0 %v1408_v32 }
  0x8c   : > { %439 = vperm.xlu0 %1214, %v436_v9   ;;  %v1216_v9 = vld [vmem:[#allocation8 + $0x40] sm:$0xff]  }
  0x8d   : > { %1084 = vmatprep.subr.bf16.mxu1 %v1216_v9 }
  0x8e   : > { %628 = vrot.lane.b32.xlu1 %v453_v23, %s1407_s14  ;;  %1085 = vmatpush3.bf16.msra.mxu1 %v1217_v10 }
  0x8f   : > { %1086 = vmatprep.subr.bf16.mxu1 %v1218_v13 }
  0x90   : > { %1215 = vset.pattern.permute.xlu0 %v1394_v4 }
  0x92   : > { %682 = vrot.lane.b32.xlu1 %v518_v25, %s1409_s26  ;;  %1087 = vmatpush3.bf16.msra.mxu1 %v1219_v14 }
  0x93   : > { %1088 = vmatprep.subr.bf16.mxu1 %v1220_v18 }
  0x96   : > { %684 = vrot.lane.b32.xlu1 %v522_v27, %s1409_s26  ;;  %1089 = vmatpush3.bf16.msra.mxu1 %v1221_v20 }
  0x97   : > { %1090 = vmatprep.subr.bf16.mxu1 %v1222_v28 }
  0x9a   : > { %1091 = vmatpush3.bf16.msra.mxu1 %v1223_v29 }
  0xe4   : > { %v1634_v33 = vpop.permute.xlu1 %490 }
  0xe5   : > { %v493_v34 = vmul.f32 0.0, %v1634_v33  ;;  %v351_v35 = vpop.permute.xlu0 %350 }
  0xe7   : > { %499 = vrot.lane.b32.xlu1 %v493_v34, %s1410_s17  ;;  %v1224_v34 = vld [vmem:[#allocation8 + $0x60] sm:$0xff]  }
  0xe8   : > { %1092 = vmatprep.subr.bf16.mxu1 %v1224_v34 }
  0xe9   : > { %v1638_v36 = vpop.permute.xlu1 %536  ;;  %v1640_v38 = vpop.permute.xlu0 %467 }
  0xed   : > { %v455_v37 = vpop.permute.xlu1 %454  ;;  %v1647_v43 = vpop.permute.xlu0 %456 }
  0xee   : > { %v463_v39 = vmul.f32 0.0, %v455_v37  ;;  %v459_v15 = vsel %vm458_vm2, %v455_v37, %v1647_v43 }
  0xf0   : > { %v470_v40 = vmul.f32 %v1640_v38, %v463_v39 }
  0xf1   : > { %v1643_v41 = vpop.permute.xlu1 %523 }
  0xf2   : > { %v532_v42 = vmul.f32 0.0, %v1643_v41  ;;  %476 = vrot.lane.b32.xlu0 %v470_v40, %s1409_s26  ;;  %v1653_v46 = vpop.permute.xlu0 %571 }
  0xf4   : > { %v539_v44 = vmul.f32 %v1638_v36, %v532_v42  ;;  %v1225_v42 = vld [vmem:[#allocation8 + $0x20] sm:$0xff]  }
  0xf5   : > { %v1650_v45 = vpop.permute.xlu1 %525  ;;  %1093 = vmatpush3.bf16.msra.mxu1 %v1225_v42 }
  0xf6   : > { %545 = vrot.lane.b32.xlu0 %v539_v44, %s1407_s14  ;;  %v528_v21 = vsel %vm527_vm3, %v1643_v41, %v1650_v45 }
  0xf7   : > { %v1658_v51 = vpop.permute.xlu0 %605 }
  0xf9   : > { %v559_v47 = vpop.permute.xlu1 %558 }
  0xfa   : > { %v567_v48 = vmul.f32 0.0, %v559_v47 }
  0xfc   : > { %v574_v49 = vmul.f32 %v1653_v46, %v567_v48  ;;  %v1663_v53 = vpop.permute.xlu0 %638 }
  0xfd   : > { %v1656_v50 = vpop.permute.xlu1 %560 }
  0xfe   : > { %580 = vrot.lane.b32.xlu1 %v574_v49, %s1405_s29  ;;  %v563_v22 = vsel %vm562_vm4, %v559_v47, %v1656_v50  ;;  %v1226_v47 = vld [vmem:[#allocation8 + $0x68] sm:$0xff]  }
  0xff   : > { %1094 = vmatprep.subr.bf16.mxu1 %v1226_v47 }
 0x101   : > { %v1661_v52 = vpop.permute.xlu1 %593  ;;  %v1671_v58 = vpop.permute.xlu0 %660 }
 0x102   : > { %v665_v59 = vmul.f32 0.0, %v1671_v58 }
 0x105   : > { %v1665_v54 = vpop.permute.xlu1 %595 }
 0x106   : > { %v603_v55 = vmul.f32 0.0, %v1665_v54  ;;  %v597_v44 = vsel %vm586_vm5, %v1661_v52, %v1665_v54 }
 0x108   : > { %v610_v56 = vmul.f32 %v1658_v51, %v603_v55  ;;  %v1227_v55 = vld [vmem:[#allocation8 + $0x28] sm:$0xff]  }
 0x109   : > { %v1669_v57 = vpop.permute.xlu1 %626  ;;  %1095 = vmatpush3.bf16.msra.mxu1 %v1227_v55 }
 0x10a   : > { %618 = vrot.lane.b32.xlu1 %v610_v56, %s1402_s19  ;;  %v1228_v56 = vld [vmem:[#allocation8 + $0x70] sm:$0xff]  }
 0x10b   : > { %1096 = vmatprep.subr.bf16.mxu1 %v1228_v56 }
 0x10d   : > { %v1675_v60 = vpop.permute.xlu1 %628 }
 0x10e   : > { %v636_v61 = vmul.f32 0.0, %v1675_v60  ;;  %673 = vrot.lane.b32.xlu1 %v665_v59, %s1411_s22 }
 0x110   : > { %v643_v62 = vmul.f32 %v1663_v53, %v636_v61 }
 0x111   : > { %v683_v37 = vpop.permute.xlu1 %682 }
 0x112   : > { %651 = vrot.lane.b32.xlu0 %v643_v62, %s1400_s21  ;;  %v1230_v62 = vld [vmem:[#allocation8 + $0x78] sm:$0xff]  }
 0x115   : > { %v685_v59 = vpop.permute.xlu1 %684 }
 0x116   : > { %v686_v61 = vsel %vm482_vm7, %v683_v37, %v685_v59 }
 0x145   : > { %v407_v63 = vpop.f32.mrb[0].mxu0 }
 0x146   : > { %v408_v0 = vadd.f32 %v407_v63, %v351_v35  ;;  %v409_v1 = vpop.f32.mrb[1].mxu0  ;;  %v692_v63 = vmul.f32 0.0, %v685_v59 }
 0x147   : > { %v410_v2 = vadd.f32 %v409_v1, %v351_v35  ;;  %v411_v3 = vpop.f32.mrb[2].mxu0 }
 0x148   : > { %v414_v4 = vmax.f32 %v408_v0, 0.0  ;;  %v412_v5 = vpop.f32.mrb[3].mxu0 }
 0x149   : > { %v415_v6 = vmax.f32 %v410_v2, 0.0 }
 0x14a   : > { %v426_v7 = vrot.slane %v414_v4, 4 }
 0x14b   : > { %v427_v8 = vrot.slane %v415_v6, 4 }
 0x14c   : > { %430 = vst [vmem:[#allocation2 + $0x8] sm:$0xf0] %v426_v7 }
 0x14d   : > { %431 = vst [vmem:[#allocation2 + $0x10] sm:$0xf0] %v427_v8 }
 0x153   : > { %v1681_v11 = vld [vmem:[#allocation2 + $0x8] sm:$0xff] }
 0x154   : > { %v1683_v12 = vld [vmem:[#allocation2 + $0x10] sm:$0xff]  ;;  %v494_v16 = vmul.f32 %v1634_v33, %v1681_v11  ;;  %v464_v19 = vmul.f32 %v459_v15, %v1681_v11  ;;  %v568_v26 = vmul.f32 %v563_v22, %v1681_v11  ;;  %v533_v27 = vmul.f32 %v528_v21, %v1681_v11 }
 0x155   : > { %v495_v17 = vmul.f32 %v1634_v33, %v1683_v12  ;;  %v664_v23 = vmul.f32 %v1671_v58, %v1683_v12  ;;  %v634_v30 = vmul.f32 %v1669_v57, %v1681_v11  ;;  %v601_v33 = vmul.f32 %v1661_v52, %v1681_v11 }
 0x156   : > { %501 = vrot.lane.b32.xlu1 %v494_v16, %s1410_s17  ;;  %v471_v25 = vmul.f32 %v1640_v38, %v464_v19  ;;  %v575_v31 = vmul.f32 %v1653_v46, %v568_v26  ;;  %v540_v32 = vmul.f32 %v1638_v36, %v533_v27  ;;  %v465_v40 = vmul.f32 %v1647_v43, %v1683_v12 }
 0x157   : > { %503 = vrot.lane.b32.xlu0 %v495_v17, %s1410_s17  ;;  %v641_v35 = vmul.f32 %v1663_v53, %v634_v30  ;;  %v608_v39 = vmul.f32 %v1658_v51, %v601_v33  ;;  %v569_v41 = vmul.f32 %v1656_v50, %v1683_v12  ;;  %v534_v49 = vmul.f32 %v1650_v45, %v1683_v12  ;;  %s1413_s17 = smov [#allocation9]  }
 0x158   : > { %v472_v48 = vmul.f32 %v1640_v38, %v465_v40  ;;  %v602_v50 = vmul.f32 %v597_v44, %v1683_v12  ;;  %v630_v38 = vsel %vm551_vm6, %v1669_v57, %v1675_v60  ;;  %v663_v57 = vmul.f32 %v1671_v58, %v1681_v11 }
 0x159   : > { %v576_v43 = vmul.f32 %v1653_v46, %v569_v41  ;;  %v1229_v46 = vld [vmem:[#allocation8 + $0x30] sm:$0xff]   ;;  %v635_v52 = vmul.f32 %v630_v38, %v1683_v12  ;;  %v541_v45 = vmul.f32 %v1638_v36, %v534_v49  ;;  %v691_v60 = vmul.f32 %v686_v61, %v1683_v12  ;;  %v1231_v36 = vld [vmem:[#allocation8 + $0x38] sm:$0xff]   ;;  %v500_v4 = vpop.permute.xlu1 %499 }
 0x15a   : > { %478 = vrot.lane.b32.xlu1 %v471_v25, %s1409_s26  ;;  %v609_v54 = vmul.f32 %v1658_v51, %v602_v50  ;;  %1097 = vmatpush3.bf16.msra.mxu1 %v1229_v46  ;;  %v695_v51 = vpop.permute.xlu0 %694  ;;  %v690_v1 = vmul.f32 %v683_v37, %v1681_v11 }
 0x15b   : > { %671 = vrot.lane.b32.xlu0 %v664_v23, %s1411_s22  ;;  %v642_v0 = vmul.f32 %v1663_v53, %v635_v52  ;;  %1098 = vmatprep.subr.bf16.mxu1 %v1230_v62  ;;  %v699_v2 = vmul.f32 %v695_v51, %v692_v63  ;;  %v698_v3 = vmul.f32 %v695_v51, %v691_v60 }
 0x15c   : > { %v697_v58 = vmul.f32 %v695_v51, %v690_v1 }
 0x15e   : > { %582 = vrot.lane.b32.xlu1 %v575_v31, %s1405_s29  ;;  %1099 = vmatpush3.bf16.msra.mxu1 %v1231_v36  ;;  %v440_v53 = vpop.permute.xlu0 %439 }
 0x15f   : > { %547 = vrot.lane.b32.xlu0 %v540_v32, %s1407_s14  ;;  %v442_v18 = vmul.f32 %v440_v53, %v1681_v11  ;;  %v443_v28 = vmul.f32 %v440_v53, %v1683_v12 }
 0x162   : > { %647 = vrot.lane.b32.xlu1 %v641_v35, %s1400_s21 }
 0x163   : > { %614 = vrot.lane.b32.xlu0 %v608_v39, %s1402_s19 }
 0x164   : > { %v477_v5 = vpop.permute.xlu0 %476 }
 0x166   : > { %480 = vrot.lane.b32.xlu1 %v472_v48, %s1409_s26  ;;  %s944_s26 = scalar_lea.sflag [#allocation5], %s336_s13 }
 0x167   : > { %584 = vrot.lane.b32.xlu0 %v576_v43, %s1405_s29 }
 0x168   : > { %v546_v8 = vpop.permute.xlu0 %545 }
 0x16a   : > { %549 = vrot.lane.b32.xlu1 %v541_v45, %s1407_s14  ;;  %s1777_s14 = scalar_lea.hbm %s1827_s8, %s1080_s23 }
 0x16b   : > { %616 = vrot.lane.b32.xlu0 %v609_v54, %s1402_s19 }
 0x16e   : > { %649 = vrot.lane.b32.xlu1 %v642_v0, %s1400_s21 }
 0x16f   : > { %669 = vrot.lane.b32.xlu0 %v663_v57, %s1411_s22  ;;  %s1320_s22 = sshll.u32 %s1413_s17, 4  ;;  %s1321_s22 = int_to_ptr.vmem [resolvable:$false] %s1320_s22 }
 0x170   : > { %v581_v6 = vpop.permute.xlu1 %580  ;;  %s1322_s24 = scalar_lea.vmem %s1321_s22, 256 }
 0x172   : > { %705 = vrot.lane.b32.xlu1 %v698_v3, %s1398_s25  ;;  %v887_v3 = vld [vmem:[%s1826_s7] sm:$0xff] }
 0x173   : > { %707 = vrot.lane.b32.xlu0 %v699_v2, %s1398_s25 }
 0x176   : > { %703 = vrot.lane.b32.xlu1 %v697_v58, %s1398_s25  ;;  %s338_s25 = scalar_lea.vmem [#allocation9], %s1057_s20 }
 0x177   : > { %890 = vperm.xlu0 %1215, %v887_v3   ;;  %s957_s21 = sshll.u32 %s338_s25, 4  ;;  %s1779_s21 = int_to_ptr.vmem [resolvable:$true] %s957_s21 }
 0x178   : > { %s1316_s9 = scalar_lea.vmem %s1779_s21, 128  ;;  %p1323_p4 = scmp.lt.s32.totalorder %s1779_s21, %s1321_s22 }
 0x179   : > { %p1317_p12 = scmp.ne.s32.totalorder %s1779_s21, %s1316_s9  ;;  %p1324_p7 = scmp.lt.s32.totalorder %s1322_s24, %s1316_s9 }
 0x17b   : > { %p1318_p2 = pnand %p1317_p12, %p1844_p10  ;;  %p1325_p8 = por %p1324_p7, %p1323_p4 }
 0x17c   : > { %v619_v7 = vpop.permute.xlu1 %618 }
 0x17d   : > { %p1319_p3 = pneg %p1318_p2 }
 0x17f   : > { %p1326_p11 = pnand %p1325_p8, %p1319_p3 }
 0x180   : > { %v674_v9 = vpop.permute.xlu1 %673 }
 0x184   : > { %v652_v10 = vpop.permute.xlu0 %651 }
 0x1c8   : > { %v502_v13 = vpop.permute.xlu1 %501 }
 0x1c9   : > { %v504_v14 = vpop.permute.xlu0 %503  ;;  %v506_v25 = vsel %vm505_vm8, %v500_v4, %v502_v13 }
 0x1ca   : > { %v507_v34 = vsel %vm505_vm8, %v502_v13, %v504_v14 }
 0x1cc   : > { %v479_v15 = vpop.permute.xlu1 %478 }
 0x1cd   : > { %v672_v16 = vpop.permute.xlu0 %671  ;;  %v483_v17 = vsel %vm482_vm7, %v477_v5, %v479_v15 }
 0x1ce   : > { %v487_v21 = vadd.f32 %v483_v17, %v442_v18  ;;  %v677_v54 = vsel %vm675_vm9, %v672_v16, %v674_v9  ;;  %v885_v9 = vld [vmem:[%s1825_s6] sm:$0xf] }
 0x1d0   : > { %v583_v19 = vpop.permute.xlu1 %582  ;;  %v510_v26 = vadd.f32 %v506_v25, %v487_v21 }
 0x1d1   : > { %v548_v20 = vpop.permute.xlu0 %547  ;;  %v587_v39 = vsel %vm586_vm5, %v581_v6, %v583_v19 }
 0x1d2   : > { %v552_v27 = vsel %vm551_vm6, %v546_v8, %v548_v20 }
 0x1d3   : > { %v556_v32 = vadd.f32 %v552_v27, %v510_v26 }
 0x1d4   : > { %v648_v22 = vpop.permute.xlu1 %647 }
 0x1d5   : > { %v615_v23 = vpop.permute.xlu0 %614  ;;  %v591_v44 = vadd.f32 %v587_v39, %v556_v32 }
 0x1d8   : > { %v481_v29 = vpop.permute.xlu1 %480 }
 0x1d9   : > { %v585_v30 = vpop.permute.xlu0 %584  ;;  %v484_v31 = vsel %vm482_vm7, %v479_v15, %v481_v29 }
 0x1da   : > { %v488_v33 = vadd.f32 %v484_v31, %v443_v28  ;;  %v588_v12 = vsel %vm586_vm5, %v583_v19, %v585_v30 }
 0x1dc   : > { %v511_v11 = vadd.f32 %v507_v34, %v488_v33  ;;  %v550_v35 = vpop.permute.xlu1 %549 }
 0x1dd   : > { %v617_v37 = vpop.permute.xlu0 %616  ;;  %v553_v40 = vsel %vm551_vm6, %v548_v20, %v550_v35 }
 0x1de   : > { %v620_v41 = vsel %vm562_vm4, %v615_v23, %v617_v37  ;;  %v557_v42 = vadd.f32 %v553_v40, %v511_v11  ;;  %v621_v50 = vsel %vm562_vm4, %v617_v37, %v619_v7 }
 0x1df   : > { %v624_v48 = vadd.f32 %v620_v41, %v591_v44 }
 0x1e0   : > { %v592_v47 = vadd.f32 %v588_v12, %v557_v42  ;;  %v650_v43 = vpop.permute.xlu1 %649 }
 0x1e1   : > { %v670_v49 = vpop.permute.xlu0 %669  ;;  %v653_v55 = vsel %vm527_vm3, %v648_v22, %v650_v43  ;;  %v654_v59 = vsel %vm527_vm3, %v650_v43, %v652_v10 }
 0x1e2   : > { %v625_v56 = vadd.f32 %v621_v50, %v592_v47  ;;  %v657_v38 = vadd.f32 %v653_v55, %v624_v48  ;;  %v676_v61 = vsel %vm675_vm9, %v670_v49, %v672_v16 }
 0x1e4   : > { %v658_v46 = vadd.f32 %v654_v59, %v625_v56  ;;  %v706_v52 = vpop.permute.xlu1 %705  ;;  %v680_v60 = vadd.f32 %v676_v61, %v657_v38 }
 0x1e5   : > { %v708_v45 = vpop.permute.xlu0 %707 }
 0x1e6   : > { %v710_v62 = vsel %vm458_vm2, %v706_v52, %v708_v45  ;;  %v681_v57 = vadd.f32 %v677_v54, %v658_v46 }
 0x1e8   : > { %v704_v63 = vpop.permute.xlu1 %703  ;;  %v714_v0 = vadd.f32 %v710_v62, %v681_v57 }
 0x1e9   : > { %v709_v36 = vsel %vm458_vm2, %v704_v63, %v706_v52 }
 0x1ea   : > { %v713_v51 = vadd.f32 %v709_v36, %v680_v60  ;;  %v716_v1 = vpack.c.bf16 %v714_v0, %v714_v0 }
 0x1ec   : > { %v715_v2 = vpack.c.bf16 %v713_v51, %v713_v51  ;;  %877 = vmatprep.mubr.bf16.mxu1 %v716_v1 }
 0x1ee   : > { %878 = vmatmul.mubr.bf16.vlgmr.msra.gmra.mrb[0].mxu1 %v715_v2 }
 0x1f6   : > { %v891_v24 = vpop.permute.xlu0 %890 }
 0x2c1   : > { %v1100_v58 = vpop.f32.mrb[0].mxu1 }
 0x2c2   : > { %v1101_v53 = vpop.f32.mrb[1].mxu1 }
 0x2c3   : > { %v1102_v4 = vadd.f32 %v1101_v53, %v1100_v58  ;;  %v1103_v5 = vpop.f32.mrb[2].mxu1 }
 0x2c4   : > { %v1104_v6 = vpop.f32.mrb[3].mxu1 }
 0x2c5   : > { %v886_v7 = vpack.c.bf16 %v1102_v4, %v1102_v4 }
 0x2c7   : > { %v899_v8 = vsel %vm897_vm11, %v886_v7, 0 }
 0x2c8   : > { %1109 = vmatpush3.bf16.msra.mxu0 %v899_v8 }
 0x2cb   : > { %1111 = vmatmul.mubr.msk.bf16.vlgmr.msra.gmra.mrb[4].mxu0 %vm893_vm12, %v885_v9 }
 0x39e   : > { %v935_v10 = vpop.f32.mrb[4].mxu0 }
 0x39f   : > { %v1112_v13 = vpop.f32.mrb[5].mxu0  ;;  %v936_v14 = vadd.f32 %v935_v10, %v891_v24 }
 0x3a0   : > { %v938_v15 = vpop.f32.mrb[6].mxu0 }
 0x3a1   : > { %v941_v16 = vmax.f32 %v936_v14, 0.0  ;;  %v1113_v17 = vpop.f32.mrb[7].mxu0 }
 0x3a3   : > { %942 = vst [vmem:[%s338_s25] sm:$0xff] %v941_v16 }
 0x3a4   : > { %1329 = shalt.err (!%p1326_p11)
}
 0x3a5   : > { %s1330_s18 = scalar_lea.hbm %s1777_s14, 128  ;;  %s1334_s13 = scalar_lea.hbm %s1827_s8, 256 }
 0x3a6   : > { %p1331_p13 = scmp.ne.s32.totalorder %s1777_s14, %s1330_s18  ;;  %p1335_p6 = scmp.lt.u32.totalorder %s1777_s14, %s1827_s8 }
 0x3a7   : > { %p1336_p5 = scmp.lt.u32.totalorder %s1334_s13, %s1330_s18  ;;  %p1338_p12 = scmp.lt.u32.totalorder %s1330_s18, %s1777_s14 }
 0x3a8   : > { %p1332_p0 = pnand %p1331_p13, %p1844_p10 }
 0x3a9   : > { %p1337_p9 = por %p1336_p5, %p1335_p6 }
 0x3aa   : > { %p1333_p1 = pneg %p1332_p0 }
 0x3ab   : > { %p1339_p2 = por %p1338_p12, %p1337_p9 }
 0x3ad   : > { %p1340_p3 = pnand %p1339_p2, %p1333_p1 }
 0x3af   : > { %1343 = shalt.err (!%p1340_p3)
}
 0x3b0   : > { %1126 = dma.vmem_to_hbm [thread:$0]  (%p1844_p10), %s1779_s21, 128, %s1777_s14, %s944_s26  }
 0x3b1 PF: > { %p1148_p4 = scmp.ge.s32.totalorder %s1386_s30, 2  ;;  %s969_s25 = sand.u32 1, %s1374_s27  }
 0x3b2   : > { %p1845_p7 = scmp.ne.s32.totalorder %s1835_s16, 0  ;;  %s970_s19 = scalar_lea.sflag [#allocation5], %s969_s25 }
 0x3b4   : > { %p1139_p8 = pnand %p1148_p4, %p1845_p7 }
 0x3b6   : > { %1369 = dma.done.wait (!%p1139_p8), %s970_s19, 128  }
 0x3b7   : > { %1371 = vsyncadd (!%p1139_p8), %s970_s19, 4294967168  ;;  %s1846_s29 = sld [smem:[#allocation13_spill]]  ;;  %s1847_s9 = sld [smem:[#allocation14_spill]] }
 0x3b8   : > { %p20_p11 = scmp.ge.s32.totalorder %s1484_s11, 4   ;;  %s1848_s27 = smov %s1378_s28 }
 0x3b9   : > { %s1851_s30 = smov %s1484_s11 }
 0x3ba   :  { %22 = sbr.rel (!%p20_p11) target bundleno = 5 (0x5), region = 101 }
 0x3bd   : > { %s1849_s28 = smov %s1846_s29  ;;  %s1850_s29 = smov %s1847_s9 }
 0x3c1   :  { %975 = vsyncpa [#allocation4], 1 }
 0x3c2   :  { %977 = vsyncpa [#allocation4 + $0x1], 1 }
 0x3c3   :  { %978 = vsyncpa [#allocation7], 1 }
 0x3c4   :  { %979 = vsyncpa [#allocation5], 1 }
 0x3c5   :  { %981 = vsyncpa [#allocation5 + $0x1], 1 }

</bundles_post_ra>
